<compile_context>
chip_gen: v7x
topology: tpu7x:2x2x1
jax: 0.10.0
libtpu: 0.0.40
codegen_flags: <defaults>
</compile_context>

<pallas_src>
import functools

import jax
import jax.numpy as jnp
from jax import lax
from jax.experimental import pallas as pl
from jax.experimental.pallas import tpu as pltpu


def _round_up(x, m):
    return ((x + m - 1) // m) * m


def _sublane_packing(dtype):
    # 32-bit dtypes pack 8 rows per vreg, 16-bit 16, 8-bit 32.
    return max(8, 32 // jnp.dtype(dtype).itemsize)


def _bert_self_output_kernel(x_ref, res_ref, w_ref, b_ref, g_ref, beta_ref,
                             o_ref, *, eps):
    # x_ref:    (tm, H)  tile of flattened hidden_states (native dtype)
    # res_ref:  (tm, H)  tile of flattened input_tensor (residual)
    # w_ref:    (H, H)   dense weight, (in, out) layout, native dtype
    # b_ref / g_ref / beta_ref: (1, H) f32 epilogue params

    # Dense: feed the MXU native dtype, accumulate in f32.
    h = jnp.dot(x_ref[...], w_ref[...], preferred_element_type=jnp.float32)
    h = h + b_ref[...]

    # TODO(synk): nn.Dropout is a no-op at inference; training-time dropout
    # (mask via pltpu.prng_random_bits) is not implemented here.

    # Residual add (f32 epilogue).
    h = h + res_ref[...].astype(jnp.float32)

    # LayerNorm over the hidden (lane) axis -- single pass: mean and E[x^2].
    inv_h = 1.0 / h.shape[-1]
    mean = jnp.sum(h, axis=-1, keepdims=True) * inv_h
    msq = jnp.sum(h * h, axis=-1, keepdims=True) * inv_h
    var = jnp.maximum(msq - mean * mean, 0.0)
    inv = lax.rsqrt(var + eps)
    o_ref[...] = ((h - mean) * inv * g_ref[...] + beta_ref[...]).astype(o_ref.dtype)


def bert_self_output(hidden_states, input_tensor, weight, bias, gamma, beta,
                     *, eps=1e-12, tm=1024, stream_buffers=2,
                     weight_is_transposed=False,
                     vmem_budget_bytes=40 * 1024 * 1024):
    """Fused dense + residual + LayerNorm.

    hidden_states, input_tensor: (B, S, H)
    weight: (H, H).  PyTorch nn.Linear layout (out_features, in_features) by
      default; pass a pre-transposed (in, out) weight together with
      weight_is_transposed=True to hoist the transpose out of the forward path.
    bias, gamma, beta: (H,)
    """
    B, S, H = hidden_states.shape
    M = B * S
    act_dtype = hidden_states.dtype
    itemsize = jnp.dtype(act_dtype).itemsize
    packing = _sublane_packing(act_dtype)

    # ---- row-tile selection --------------------------------------------------
    # (a) requested tm, (b) never exceed the rows we have, (c) keep >= 2 grid
    # steps when M allows it (v7x 2-TC split), all rounded to sublane packing.
    tm_eff = min(_round_up(tm, packing),
                 _round_up(M, packing),
                 _round_up(max(pl.cdiv(M, 2), packing), packing))

    w_itemsize = jnp.dtype(weight.dtype).itemsize
    weight_bytes = H * H * w_itemsize          # single-buffered (Buffered(1))
    param_bytes = 3 * H * 4 * 2

    def _est_vmem(t):
        # x + residual + output tiles (pipelined), f32 working tile, weight, params.
        bufs = max(int(stream_buffers), 2)
        streamed = 3 * bufs * t * H * itemsize
        f32_tmp = 2 * t * H * 4
        return streamed + f32_tmp + weight_bytes + param_bytes

    # TODO(synk): column-tile the weight with a second ("arbitrary") grid axis
    # once the resident (H, H) weight alone no longer fits VMEM (H >= ~4K bf16
    # on v7x); BERT-sized H is assumed here.
    while tm_eff > packing and _est_vmem(tm_eff) > vmem_budget_bytes:
        tm_eff = max(packing, _round_up(tm_eff // 2, packing))

    grid = (pl.cdiv(M, tm_eff),)
    # No point in >2 stream buffers when the grid has fewer steps than buffers.
    stream_buffers = int(max(2, min(int(stream_buffers), grid[0])))
    vmem_limit = int(min(max(2 * _est_vmem(tm_eff), 32 * 1024 * 1024),
                         56 * 1024 * 1024))

    x2 = hidden_states.reshape(M, H)
    r2 = input_tensor.reshape(M, H)
    # (in, out) layout so the kernel computes x @ W directly.
    w_t = weight if weight_is_transposed else weight.T
    b2 = bias.astype(jnp.float32).reshape(1, H)      # f32 epilogue params
    g2 = gamma.astype(jnp.float32).reshape(1, H)
    beta2 = beta.astype(jnp.float32).reshape(1, H)

    kernel = functools.partial(_bert_self_output_kernel, eps=eps)

    cost = pl.CostEstimate(
        flops=2 * M * H * H,
        transcendentals=M,
        bytes_accessed=3 * M * H * itemsize + H * H * w_itemsize + 3 * H * 4,
    )

    def _call(use_pipeline_modes):
        stream_kw = {}
        const_kw = {}
        if use_pipeline_modes:
            const_kw = dict(pipeline_mode=pl.Buffered(1))
            if stream_buffers != 2:
                stream_kw = dict(pipeline_mode=pl.Buffered(stream_buffers))

        def row_spec():
            return pl.BlockSpec((tm_eff, H), lambda i: (i, 0), **stream_kw)

        def const_spec(shape):
            return pl.BlockSpec(shape, lambda i: (0, 0), **const_kw)

        return pl.pallas_call(
            kernel,
            out_shape=jax.ShapeDtypeStruct((M, H), act_dtype),
            grid_spec=pltpu.PrefetchScalarGridSpec(
                num_scalar_prefetch=0,
                grid=grid,
                in_specs=[
                    row_spec(),            # x tile (streamed)
                    row_spec(),            # residual tile (streamed)
                    const_spec((H, H)),    # weight (resident, single-buffered)
                    const_spec((1, H)),    # bias
                    const_spec((1, H)),    # gamma
                    const_spec((1, H)),    # beta
                ],
                out_specs=row_spec(),
            ),
            compiler_params=pltpu.CompilerParams(
                dimension_semantics=("parallel",),
                vmem_limit_bytes=vmem_limit,
            ),
            cost_estimate=cost,
        )(x2, r2, w_t, b2, g2, beta2)

    try:
        out2 = _call(True)
    except Exception:
        # Fallback for toolchains without BlockSpec pipeline_mode support:
        # identical kernel, default double-buffering on every operand.
        out2 = _call(False)

    return out2.reshape(B, S, H)


def _reference(hidden_states, input_tensor, weight, bias, gamma, beta, eps):
    h = jnp.einsum("bsh,oh->bso", hidden_states.astype(jnp.float32),
                   weight.astype(jnp.float32)) + bias.astype(jnp.float32)
    h = h + input_tensor.astype(jnp.float32)
    mean = jnp.mean(h, axis=-1, keepdims=True)
    var = jnp.mean((h - mean) ** 2, axis=-1, keepdims=True)
    y = ((h - mean) * lax.rsqrt(var + eps) * gamma.astype(jnp.float32)
         + beta.astype(jnp.float32))
    return y.astype(hidden_states.dtype)


if __name__ == "__main__":
    eps = 1e-12
    key = jax.random.PRNGKey(0)
    k1, k2, k3, k4 = jax.random.split(key, 4)

    # Case 1: small BERT-like config, batch=2, seq=8, hidden=32, f32,
    # pre-transposed (in, out) weight (transpose hoisted out of forward).
    B, S, H = 2, 8, 32
    hidden_states = jax.random.normal(k1, (B, S, H), dtype=jnp.float32)
    input_tensor = jax.random.normal(k2, (B, S, H), dtype=jnp.float32)
    weight = jax.random.normal(k3, (H, H), dtype=jnp.float32) * (1.0 / jnp.sqrt(H))
    bias = jax.random.normal(k4, (H,), dtype=jnp.float32) * 0.02
    gamma = jnp.ones((H,), dtype=jnp.float32)
    beta = jnp.zeros((H,), dtype=jnp.float32)

    w_in_out = jnp.asarray(weight.T)
    out = bert_self_output(hidden_states, input_tensor, w_in_out, bias, gamma,
                           beta, eps=eps, weight_is_transposed=True)
    out = jax.block_until_ready(out)
    ref = _reference(hidden_states, input_tensor, weight, bias, gamma, beta, eps)
    assert out.shape == (B, S, H)
    assert jnp.allclose(out, ref, atol=1e-4, rtol=1e-4), "mismatch vs reference"

    # Case 2: ragged rows (B*S not a multiple of the row tile) -- exercises the
    # masked boundary block (no jnp.pad copy) and the torch-layout weight path.
    B2, S2 = 2, 5
    hs2 = jax.random.normal(k1, (B2, S2, H), dtype=jnp.float32)
    it2 = jax.random.normal(k2, (B2, S2, H), dtype=jnp.float32)
    out2 = bert_self_output(hs2, it2, weight, bias, gamma, beta, eps=eps)
    out2 = jax.block_until_ready(out2)
    ref2 = _reference(hs2, it2, weight, bias, gamma, beta, eps)
    assert out2.shape == (B2, S2, H)
    assert jnp.allclose(out2, ref2, atol=1e-4, rtol=1e-4), "mismatch (ragged)"

    # Case 3: bf16 activations/weights -- exercises the 16-sublane packing
    # rounding and the native-dtype MXU feed.
    hs3 = hidden_states.astype(jnp.bfloat16)
    it3 = input_tensor.astype(jnp.bfloat16)
    w3 = weight.astype(jnp.bfloat16)
    b3 = bias.astype(jnp.bfloat16)
    out3 = bert_self_output(hs3, it3, w3, b3, gamma, beta, eps=eps)
    out3 = jax.block_until_ready(out3)
    ref3 = _reference(hs3, it3, w3, b3, gamma, beta, eps)
    assert out3.shape == (B, S, H)
    assert jnp.allclose(out3.astype(jnp.float32), ref3.astype(jnp.float32),
                        atol=3e-2, rtol=3e-2), "mismatch (bf16)"

    print("KERNEL_OK")
</pallas_src>

<mosaic_0001>
module attributes {stable_mosaic.version = 11 : i64} {
  func.func @_bert_self_output_kernel(%arg0: i32, %arg1: memref<8x32xf32, #tpu.memory_space<vmem>>, %arg2: memref<8x32xf32, #tpu.memory_space<vmem>>, %arg3: memref<32x32xf32, #tpu.memory_space<vmem>>, %arg4: memref<1x32xf32, #tpu.memory_space<vmem>>, %arg5: memref<1x32xf32, #tpu.memory_space<vmem>>, %arg6: memref<1x32xf32, #tpu.memory_space<vmem>>, %arg7: memref<8x32xf32, #tpu.memory_space<vmem>>) attributes {dimension_semantics = [#tpu.dimension_semantics<parallel>], iteration_bounds = array<i64: 2>, scalar_prefetch = 0 : i64, scratch_operands = 0 : i64, tpu.core_type = #tpu.core_type<tc>, window_params = [{transform_indices = @transform_0, window_bounds = array<i64: 8, 32>}, {transform_indices = @transform_1, window_bounds = array<i64: 8, 32>}, {pipeline_mode = #tpu.pipeline_mode<synchronous>, transform_indices = @transform_2, window_bounds = array<i64: 32, 32>}, {pipeline_mode = #tpu.pipeline_mode<synchronous>, transform_indices = @transform_3, window_bounds = array<i64: 1, 32>}, {pipeline_mode = #tpu.pipeline_mode<synchronous>, transform_indices = @transform_4, window_bounds = array<i64: 1, 32>}, {pipeline_mode = #tpu.pipeline_mode<synchronous>, transform_indices = @transform_5, window_bounds = array<i64: 1, 32>}, {transform_indices = @transform_6, window_bounds = array<i64: 8, 32>}]} {
    %c0 = arith.constant 0 : index
    %c0_0 = arith.constant 0 : index
    %0 = vector.load %arg1[%c0, %c0_0] : memref<8x32xf32, #tpu.memory_space<vmem>>, vector<8x32xf32>
    %c0_1 = arith.constant 0 : index
    %c0_2 = arith.constant 0 : index
    %1 = vector.load %arg3[%c0_1, %c0_2] : memref<32x32xf32, #tpu.memory_space<vmem>>, vector<32x32xf32>
    %cst = arith.constant dense<0.000000e+00> : vector<8x32xf32>
    %2 = tpu.matmul %0, %1, %cst {dimension_numbers = #tpu.dot_dimension_numbers<[1], [0], [0], [1], [0, 0, 1, 1], [], []>} : vector<8x32xf32>, vector<32x32xf32>, vector<8x32xf32> -> vector<8x32xf32>
    %c0_3 = arith.constant 0 : index
    %c0_4 = arith.constant 0 : index
    %3 = vector.load %arg4[%c0_3, %c0_4] : memref<1x32xf32, #tpu.memory_space<vmem>>, vector<1x32xf32>
    %4 = vector.broadcast %3 : vector<1x32xf32> to vector<8x32xf32>
    %5 = arith.addf %2, %4 : vector<8x32xf32>
    %c0_5 = arith.constant 0 : index
    %c0_6 = arith.constant 0 : index
    %6 = vector.load %arg2[%c0_5, %c0_6] : memref<8x32xf32, #tpu.memory_space<vmem>>, vector<8x32xf32>
    %7 = arith.addf %5, %6 : vector<8x32xf32>
    %cst_7 = arith.constant dense<0.000000e+00> : vector<8xf32>
    %8 = vector.multi_reduction <add>, %7, %cst_7 [1] : vector<8x32xf32> to vector<8xf32>
    %9 = vector.shape_cast %8 : vector<8xf32> to vector<8x1xf32>
    %cst_8 = arith.constant 3.125000e-02 : f32
    %10 = vector.broadcast %cst_8 : f32 to vector<8x1xf32>
    %11 = arith.mulf %9, %10 : vector<8x1xf32>
    %12 = arith.mulf %7, %7 : vector<8x32xf32>
    %cst_9 = arith.constant dense<0.000000e+00> : vector<8xf32>
    %13 = vector.multi_reduction <add>, %12, %cst_9 [1] : vector<8x32xf32> to vector<8xf32>
    %14 = vector.shape_cast %13 : vector<8xf32> to vector<8x1xf32>
    %cst_10 = arith.constant 3.125000e-02 : f32
    %15 = vector.broadcast %cst_10 : f32 to vector<8x1xf32>
    %16 = arith.mulf %14, %15 : vector<8x1xf32>
    %17 = arith.mulf %11, %11 : vector<8x1xf32>
    %18 = arith.subf %16, %17 : vector<8x1xf32>
    %cst_11 = arith.constant 0.000000e+00 : f32
    %19 = vector.broadcast %cst_11 : f32 to vector<8x1xf32>
    %20 = arith.maximumf %18, %19 : vector<8x1xf32>
    %cst_12 = arith.constant 9.99999996E-13 : f32
    %21 = vector.broadcast %cst_12 : f32 to vector<8x1xf32>
    %22 = arith.addf %20, %21 : vector<8x1xf32>
    %23 = math.rsqrt %22 : vector<8x1xf32>
    %24 = vector.broadcast %11 : vector<8x1xf32> to vector<8x32xf32>
    %25 = arith.subf %7, %24 : vector<8x32xf32>
    %26 = vector.broadcast %23 : vector<8x1xf32> to vector<8x32xf32>
    %27 = arith.mulf %25, %26 : vector<8x32xf32>
    %c0_13 = arith.constant 0 : index
    %c0_14 = arith.constant 0 : index
    %28 = vector.load %arg5[%c0_13, %c0_14] : memref<1x32xf32, #tpu.memory_space<vmem>>, vector<1x32xf32>
    %29 = vector.broadcast %28 : vector<1x32xf32> to vector<8x32xf32>
    %30 = arith.mulf %27, %29 : vector<8x32xf32>
    %c0_15 = arith.constant 0 : index
    %c0_16 = arith.constant 0 : index
    %31 = vector.load %arg6[%c0_15, %c0_16] : memref<1x32xf32, #tpu.memory_space<vmem>>, vector<1x32xf32>
    %32 = vector.broadcast %31 : vector<1x32xf32> to vector<8x32xf32>
    %33 = arith.addf %30, %32 : vector<8x32xf32>
    %c0_17 = arith.constant 0 : index
    %c0_18 = arith.constant 0 : index
    %34 = vector.load %arg7[%c0_17, %c0_18] : memref<8x32xf32, #tpu.memory_space<vmem>>, vector<8x32xf32>
    tpu.vector_store %arg7[%c0_17, %c0_18], %33 {strides = array<i32>} : memref<8x32xf32, #tpu.memory_space<vmem>>, vector<8x32xf32>,
    return
  }
  func.func @transform_0(%arg0: i32) -> (i32, i32) {
    %c0_i32 = arith.constant 0 : i32
    %c0_i32_0 = arith.constant 0 : i32
    return %arg0, %c0_i32 : i32, i32
  }
  func.func @transform_1(%arg0: i32) -> (i32, i32) {
    %c0_i32 = arith.constant 0 : i32
    %c0_i32_0 = arith.constant 0 : i32
    return %arg0, %c0_i32 : i32, i32
  }
  func.func @transform_2(%arg0: i32) -> (i32, i32) {
    %c0_i32 = arith.constant 0 : i32
    %c0_i32_0 = arith.constant 0 : i32
    %c0_i32_1 = arith.constant 0 : i32
    return %c0_i32, %c0_i32_0 : i32, i32
  }
  func.func @transform_3(%arg0: i32) -> (i32, i32) {
    %c0_i32 = arith.constant 0 : i32
    %c0_i32_0 = arith.constant 0 : i32
    %c0_i32_1 = arith.constant 0 : i32
    return %c0_i32, %c0_i32_0 : i32, i32
  }
  func.func @transform_4(%arg0: i32) -> (i32, i32) {
    %c0_i32 = arith.constant 0 : i32
    %c0_i32_0 = arith.constant 0 : i32
    %c0_i32_1 = arith.constant 0 : i32
    return %c0_i32, %c0_i32_0 : i32, i32
  }
  func.func @transform_5(%arg0: i32) -> (i32, i32) {
    %c0_i32 = arith.constant 0 : i32
    %c0_i32_0 = arith.constant 0 : i32
    %c0_i32_1 = arith.constant 0 : i32
    return %c0_i32, %c0_i32_0 : i32, i32
  }
  func.func @transform_6(%arg0: i32) -> (i32, i32) {
    %c0_i32 = arith.constant 0 : i32
    %c0_i32_0 = arith.constant 0 : i32
    return %arg0, %c0_i32 : i32, i32
  }
}

module attributes {stable_mosaic.version = 11 : i64} {
  func.func @_bert_self_output_kernel(%arg0: i32, %arg1: memref<8x32xf32, #tpu.memory_space<vmem>>, %arg2: memref<8x32xf32, #tpu.memory_space<vmem>>, %arg3: memref<32x32xf32, #tpu.memory_space<vmem>>, %arg4: memref<1x32xf32, #tpu.memory_space<vmem>>, %arg5: memref<1x32xf32, #tpu.memory_space<vmem>>, %arg6: memref<1x32xf32, #tpu.memory_space<vmem>>, %arg7: memref<8x32xf32, #tpu.memory_space<vmem>>) attributes {dimension_semantics = [#tpu.dimension_semantics<parallel>], iteration_bounds = array<i64: 2>, scalar_prefetch = 0 : i64, scratch_operands = 0 : i64, tpu.core_type = #tpu.core_type<tc>, window_params = [{transform_indices = @transform_0, window_bounds = array<i64: 8, 32>}, {transform_indices = @transform_1, window_bounds = array<i64: 8, 32>}, {pipeline_mode = #tpu.pipeline_mode<synchronous>, transform_indices = @transform_2, window_bounds = array<i64: 32, 32>}, {pipeline_mode = #tpu.pipeline_mode<synchronous>, transform_indices = @transform_3, window_bounds = array<i64: 1, 32>}, {pipeline_mode = #tpu.pipeline_mode<synchronous>, transform_indices = @transform_4, window_bounds = array<i64: 1, 32>}, {pipeline_mode = #tpu.pipeline_mode<synchronous>, transform_indices = @transform_5, window_bounds = array<i64: 1, 32>}, {transform_indices = @transform_6, window_bounds = array<i64: 8, 32>}]} {
    %c0 = arith.constant 0 : index
    %c0_0 = arith.constant 0 : index
    %0 = vector.load %arg1[%c0, %c0_0] : memref<8x32xf32, #tpu.memory_space<vmem>>, vector<8x32xf32>
    %c0_1 = arith.constant 0 : index
    %c0_2 = arith.constant 0 : index
    %1 = vector.load %arg3[%c0_1, %c0_2] : memref<32x32xf32, #tpu.memory_space<vmem>>, vector<32x32xf32>
    %cst = arith.constant dense<0.000000e+00> : vector<8x32xf32>
    %2 = tpu.matmul %0, %1, %cst {dimension_numbers = #tpu.dot_dimension_numbers<[1], [0], [0], [1], [0, 0, 1, 1], [], []>} : vector<8x32xf32>, vector<32x32xf32>, vector<8x32xf32> -> vector<8x32xf32>
    %c0_3 = arith.constant 0 : index
    %c0_4 = arith.constant 0 : index
    %3 = vector.load %arg4[%c0_3, %c0_4] : memref<1x32xf32, #tpu.memory_space<vmem>>, vector<1x32xf32>
    %4 = vector.broadcast %3 : vector<1x32xf32> to vector<8x32xf32>
    %5 = arith.addf %2, %4 : vector<8x32xf32>
    %c0_5 = arith.constant 0 : index
    %c0_6 = arith.constant 0 : index
    %6 = vector.load %arg2[%c0_5, %c0_6] : memref<8x32xf32, #tpu.memory_space<vmem>>, vector<8x32xf32>
    %7 = arith.addf %5, %6 : vector<8x32xf32>
    %cst_7 = arith.constant dense<0.000000e+00> : vector<8xf32>
    %8 = vector.multi_reduction <add>, %7, %cst_7 [1] : vector<8x32xf32> to vector<8xf32>
    %9 = vector.shape_cast %8 : vector<8xf32> to vector<8x1xf32>
    %cst_8 = arith.constant 3.125000e-02 : f32
    %10 = vector.broadcast %cst_8 : f32 to vector<8x1xf32>
    %11 = arith.mulf %9, %10 : vector<8x1xf32>
    %12 = arith.mulf %7, %7 : vector<8x32xf32>
    %cst_9 = arith.constant dense<0.000000e+00> : vector<8xf32>
    %13 = vector.multi_reduction <add>, %12, %cst_9 [1] : vector<8x32xf32> to vector<8xf32>
    %14 = vector.shape_cast %13 : vector<8xf32> to vector<8x1xf32>
    %cst_10 = arith.constant 3.125000e-02 : f32
    %15 = vector.broadcast %cst_10 : f32 to vector<8x1xf32>
    %16 = arith.mulf %14, %15 : vector<8x1xf32>
    %17 = arith.mulf %11, %11 : vector<8x1xf32>
    %18 = arith.subf %16, %17 : vector<8x1xf32>
    %cst_11 = arith.constant 0.000000e+00 : f32
    %19 = vector.broadcast %cst_11 : f32 to vector<8x1xf32>
    %20 = arith.maximumf %18, %19 : vector<8x1xf32>
    %cst_12 = arith.constant 9.99999996E-13 : f32
    %21 = vector.broadcast %cst_12 : f32 to vector<8x1xf32>
    %22 = arith.addf %20, %21 : vector<8x1xf32>
    %23 = math.rsqrt %22 : vector<8x1xf32>
    %24 = vector.broadcast %11 : vector<8x1xf32> to vector<8x32xf32>
    %25 = arith.subf %7, %24 : vector<8x32xf32>
    %26 = vector.broadcast %23 : vector<8x1xf32> to vector<8x32xf32>
    %27 = arith.mulf %25, %26 : vector<8x32xf32>
    %c0_13 = arith.constant 0 : index
    %c0_14 = arith.constant 0 : index
    %28 = vector.load %arg5[%c0_13, %c0_14] : memref<1x32xf32, #tpu.memory_space<vmem>>, vector<1x32xf32>
    %29 = vector.broadcast %28 : vector<1x32xf32> to vector<8x32xf32>
    %30 = arith.mulf %27, %29 : vector<8x32xf32>
    %c0_15 = arith.constant 0 : index
    %c0_16 = arith.constant 0 : index
    %31 = vector.load %arg6[%c0_15, %c0_16] : memref<1x32xf32, #tpu.memory_space<vmem>>, vector<1x32xf32>
    %32 = vector.broadcast %31 : vector<1x32xf32> to vector<8x32xf32>
    %33 = arith.addf %30, %32 : vector<8x32xf32>
    %c0_17 = arith.constant 0 : index
    %c0_18 = arith.constant 0 : index
    %34 = vector.load %arg7[%c0_17, %c0_18] : memref<8x32xf32, #tpu.memory_space<vmem>>, vector<8x32xf32>
    tpu.vector_store %arg7[%c0_17, %c0_18], %33 {strides = array<i32>} : memref<8x32xf32, #tpu.memory_space<vmem>>, vector<8x32xf32>,
    return
  }
  func.func @transform_0(%arg0: i32) -> (i32, i32) {
    %c0_i32 = arith.constant 0 : i32
    %c0_i32_0 = arith.constant 0 : i32
    return %arg0, %c0_i32 : i32, i32
  }
  func.func @transform_1(%arg0: i32) -> (i32, i32) {
    %c0_i32 = arith.constant 0 : i32
    %c0_i32_0 = arith.constant 0 : i32
    return %arg0, %c0_i32 : i32, i32
  }
  func.func @transform_2(%arg0: i32) -> (i32, i32) {
    %c0_i32 = arith.constant 0 : i32
    %c0_i32_0 = arith.constant 0 : i32
    %c0_i32_1 = arith.constant 0 : i32
    return %c0_i32, %c0_i32_0 : i32, i32
  }
  func.func @transform_3(%arg0: i32) -> (i32, i32) {
    %c0_i32 = arith.constant 0 : i32
    %c0_i32_0 = arith.constant 0 : i32
    %c0_i32_1 = arith.constant 0 : i32
    return %c0_i32, %c0_i32_0 : i32, i32
  }
  func.func @transform_4(%arg0: i32) -> (i32, i32) {
    %c0_i32 = arith.constant 0 : i32
    %c0_i32_0 = arith.constant 0 : i32
    %c0_i32_1 = arith.constant 0 : i32
    return %c0_i32, %c0_i32_0 : i32, i32
  }
  func.func @transform_5(%arg0: i32) -> (i32, i32) {
    %c0_i32 = arith.constant 0 : i32
    %c0_i32_0 = arith.constant 0 : i32
    %c0_i32_1 = arith.constant 0 : i32
    return %c0_i32, %c0_i32_0 : i32, i32
  }
  func.func @transform_6(%arg0: i32) -> (i32, i32) {
    %c0_i32 = arith.constant 0 : i32
    %c0_i32_0 = arith.constant 0 : i32
    return %arg0, %c0_i32 : i32, i32
  }
}

</mosaic_0001>

<bundles_post_ra>
// kernel: tpu_custom_call.1
= control target key start
LH: loop header
LB: loop body
LE: loop exit
PB: predicated region body
PF: predicated region fallthrough
CT: control target
= control target key end

     0   :  { %s1123_s0 = inlined_call_operand.hbm [shape: f32[16,32], index: 0, kind: input, shape index: {}]   ;;  %s1124_s1 = inlined_call_operand.hbm [shape: f32[16,32], index: 1, kind: input, shape index: {}]   ;;  %s1125_s2 = inlined_call_operand.hbm [shape: f32[32,32], index: 2, kind: input, shape index: {}]   ;;  %s1126_s3 = inlined_call_operand.vmem [shape: f32[1,32], index: 3, kind: input, shape index: {}]   ;;  %s1127_s4 = inlined_call_operand.vmem [shape: f32[1,32], index: 4, kind: input, shape index: {}]   ;;  %s1128_s5 = inlined_call_operand.vmem [shape: f32[1,32], index: 5, kind: input, shape index: {}]   ;;  %s1129_s6 = inlined_call_operand.hbm [shape: f32[16,32], index: 6, kind: output, shape index: {}]  }
   0x1   :  { %1135 = sst [smem:[#allocation15_spill]] %s1125_s2 }
   0x2   :  { %11 = vsyncpa [#allocation3], 0 }
   0x3   :  { %13 = vsyncpa [#allocation3 + $0x1], 0 }
   0x4   :  { %14 = vsyncpa [#allocation6], 0 }
   0x5   :  { %16 = vsyncpa [#allocation6 + $0x1], 0 }
   0x6   :  { %17 = vsyncpa [#allocation4], 0 }
   0x7   :  { %19 = vsyncpa [#allocation4 + $0x1], 0  ;;  %s875_s21 = smov 0   ;;  %s877_s22 = smov 0  }
   0x8   :  { %s879_s23 = smov 0   ;;  %s881_s24 = smov 0  }
   0x9 LB: > { %1136 = sst [smem:[#allocation13_spill]] %s825_s23  ;;  %s896_s25 = sadd.s32 4294967295, %s829_s24   ;;  %s829_s24 = sphi %s881_s24, %s1158_s24   ;;  %s825_s23 = sphi %s879_s23, %s1157_s23   ;;  %s821_s22 = sphi %s877_s22, %s1156_s22   ;;  %s817_s21 = sphi %s875_s21, %s1155_s21  }
   0xa   : > { %s555_s26 = sadd.s32 4294967294, %s829_s24   ;;  %p45_p0 = scmp.ne.s32.totalorder %s821_s22, %s817_s21 }
   0xb   : > { %p1130_p1 = scmp.eq.s32.totalorder %s896_s25, 0  ;;  %p185_p3 = scmp.eq.s32.totalorder %s555_s26, 1 }
   0xc   : > { %p556_p5 = scmp.ge.s32.totalorder %s829_s24, 1  ;;  %p192_p7 = scmp.lt.s32.totalorder %s829_s24, 3 }
   0xd   : > { %p905_p4 = por %p1130_p1, %p45_p0  ;;  %p910_p6 = por %p185_p3, %p45_p0 }
   0xe   : > { %p915_p8 = pnand %p556_p5, %p192_p7  ;;  %s831_s30 = smov [#allocation7]  }
   0xf   : > { %s1137_s27 = scalar_select %p905_p4, 1, 0 }
  0x10   : > { %s1138_s28 = scalar_select %p910_p6, 1, 0 }
  0x11   : > { %s1139_s29 = scalar_select %p915_p8, 1, 0 }
  0x12   : > { %s204_s7 = sshll.u32 %s831_s30, 4  ;;  %p608_p9 = pneg %p915_p8  ;;  %s919_s7 = int_to_ptr.vmem [resolvable:$true] %s204_s7 }
  0x13   : > { %s931_s9 = sadd.s32 1, %s829_s24   ;;  %s32_s10 = sadd.s32 1, %s825_s23 }
  0x14   : > { %p926_p11 = pnand %p608_p9, %p1130_p1  ;;  %s29_s11 = ssub.s32 %s829_s24, %s931_s9 }
  0x15   : > { %s1141_s2 = sld [smem:[#allocation15_spill]] }
  0x16   : > { %p669_p13 = pneg %p926_p11 }
  0x1b   : > { %s667_s14 = scalar_lea.hbm %s1141_s2, 512 }
  0x1c   : > { %p668_p12 = scmp.ne.s32.totalorder %s1141_s2, %s667_s14  ;;  %p674_p5 = scmp.lt.u32.totalorder %s667_s14, %s1141_s2 }
  0x1e   : > { %p670_p0 = pnand %p669_p13, %p668_p12 }
  0x20   : > { %p671_p3 = pneg %p670_p0 }
  0x22   : > { %p676_p7 = pnand %p674_p5, %p671_p3 }
  0x24   : > { %679 = shalt.err (!%p676_p7)
}
  0x25   : > { %s680_s19 = scalar_lea.vmem %s919_s7, 512  ;;  %p688_p2 = scmp.lt.s32.totalorder %s919_s7, %s919_s7 }
  0x26   : > { %p681_p9 = scmp.ne.s32.totalorder %s919_s7, %s680_s19  ;;  %p689_p6 = scmp.lt.s32.totalorder %s680_s19, %s680_s19 }
  0x28   : > { %p683_p10 = pnand %p681_p9, %p669_p13  ;;  %p690_p4 = por %p689_p6, %p688_p2 }
  0x2a   : > { %p684_p1 = pneg %p683_p10 }
  0x2c   : > { %p691_p8 = pnand %p690_p4, %p684_p1 }
  0x2e   : > { %694 = shalt.err (!%p691_p8)
}
  0x2f   : > { %s832_s20 = smov 128   ;;  %s833_s26 = smov 8  }
  0x30   : > { %611 = dma.hbm_to_vmem [thread:$0]  (!%p926_p11), %s1141_s2, 512, %s919_s7, [#allocation6], %s832_s20, %s832_s20, %s833_s26  }
  0x31   : > { %p30_p2 = scmp.eq.s32.totalorder %s29_s11, 0  ;;  %p39_p1 = scmp.ne.s32.totalorder %s825_s23, %s821_s22 }
  0x32   : > { %p40_p4 = scmp.eq.s32.totalorder %s829_s24, 0  ;;  %p624_p6 = scmp.lt.s32.totalorder %s829_s24, 2 }
  0x33   : > { %s962_s13 = scalar_select %p30_p2, %s825_s23, %s32_s10  }
  0x34   : > { %p41_p8 = por %p40_p4, %p39_p1  ;;  %p1143_p10 = scmp.eq.s32.totalorder %s896_s25, 1 }
  0x35   : > { %1142 = sst [smem:[#allocation14_spill]] %s962_s13  ;;  %s227_s15 = sand.u32 1, %s825_s23  }
  0x36   : > { %p966_p12 = por %p1143_p10, %p39_p1  ;;  %s560_s16 = sshll.u32 %s829_s24, 7 }
  0x37   : > { %s972_s17 = sshll.u32 %s227_s15, 3  ;;  %s977_s7 = scalar_lea.hbm %s1123_s0, %s560_s16 }
  0x38   : > { %s1144_s14 = scalar_select %p966_p12, 1, 0 }
  0x39   : > { %s231_s10 = scalar_lea.vmem [#allocation2], %s972_s17  ;;  %p980_p11 = pnand %p624_p6, %p41_p8 }
  0x3a   : > { %s238_s11 = sshll.u32 %s231_s10, 4  ;;  %s989_s30 = scalar_lea.hbm %s1124_s1, %s560_s16  ;;  %s984_s11 = int_to_ptr.vmem [resolvable:$true] %s238_s11 }
  0x3b   : > { %s228_s12 = scalar_lea.sflag [#allocation3], %s227_s15  ;;  %s695_s8 = scalar_lea.hbm %s977_s7, 128 }
  0x3c   : > { %p696_p13 = scmp.ne.s32.totalorder %s977_s7, %s695_s8  ;;  %p697_p0 = pneg %p980_p11 }
  0x3d   : > { %s700_s2 = scalar_lea.hbm %s1123_s0, 256  ;;  %p701_p7 = scmp.lt.u32.totalorder %s977_s7, %s1123_s0 }
  0x3e   : > { %p698_p3 = pnand %p697_p0, %p696_p13  ;;  %p702_p9 = scmp.lt.u32.totalorder %s700_s2, %s695_s8 }
  0x3f   : > { %p704_p1 = scmp.lt.u32.totalorder %s695_s8, %s977_s7 }
  0x40   : > { %p699_p5 = pneg %p698_p3  ;;  %p703_p2 = por %p702_p9, %p701_p7 }
  0x42   : > { %p705_p4 = por %p704_p1, %p703_p2 }
  0x44   : > { %p706_p6 = pnand %p705_p4, %p699_p5 }
  0x46   : > { %709 = shalt.err (!%p706_p6)
}
  0x47   : > { %s710_s15 = scalar_lea.vmem %s984_s11, 128  ;;  %s834_s16 = smov [#allocation2]  }
  0x48   : > { %p711_p8 = scmp.ne.s32.totalorder %s984_s11, %s710_s15  ;;  %s715_s20 = sshll.u32 %s834_s16, 4  ;;  %s716_s20 = int_to_ptr.vmem [resolvable:$false] %s715_s20 }
  0x49   : > { %s717_s23 = scalar_lea.vmem %s716_s20, 256  ;;  %p718_p3 = scmp.lt.s32.totalorder %s984_s11, %s716_s20 }
  0x4a   : > { %p713_p10 = pnand %p711_p8, %p697_p0  ;;  %p719_p7 = scmp.lt.s32.totalorder %s717_s23, %s710_s15 }
  0x4c   : > { %p714_p13 = pneg %p713_p10  ;;  %p720_p9 = por %p719_p7, %p718_p3 }
  0x4e   : > { %p721_p2 = pnand %p720_p9, %p714_p13 }
  0x50   : > { %724 = shalt.err (!%p721_p2)
}
  0x51   : > { %615 = dma.hbm_to_vmem [thread:$0]  (!%p980_p11), %s977_s7, 128, %s984_s11, %s228_s12  }
  0x52   : > { %s245_s2 = sand.u32 1, %s829_s24   ;;  %s249_s13 = scalar_lea.vmem [#allocation5], %s972_s17 }
  0x53   : > { %s256_s26 = sshll.u32 %s249_s13, 4  ;;  %s246_s8 = scalar_lea.sflag [#allocation6], %s245_s2  ;;  %s257_s26 = int_to_ptr.vmem [resolvable:$true] %s256_s26 }
  0x54   : > { %s725_s18 = scalar_lea.hbm %s989_s30, 128  ;;  %s730_s16 = scalar_lea.hbm %s1124_s1, 256 }
  0x55   : > { %p726_p5 = scmp.ne.s32.totalorder %s989_s30, %s725_s18  ;;  %p731_p6 = scmp.lt.u32.totalorder %s989_s30, %s1124_s1 }
  0x56   : > { %p732_p8 = scmp.lt.u32.totalorder %s730_s16, %s725_s18  ;;  %p734_p13 = scmp.lt.u32.totalorder %s725_s18, %s989_s30 }
  0x57   : > { %p728_p1 = pnand %p726_p5, %p697_p0 }
  0x58   : > { %p733_p10 = por %p732_p8, %p731_p6 }
  0x59   : > { %p729_p4 = pneg %p728_p1 }
  0x5a   : > { %p735_p3 = por %p734_p13, %p733_p10 }
  0x5c   : > { %p736_p7 = pnand %p735_p3, %p729_p4 }
  0x5e   : > { %739 = shalt.err (!%p736_p7)
}
  0x5f   : > { %s740_s17 = scalar_lea.vmem %s257_s26, 128  ;;  %s835_s7 = smov [#allocation5]  }
  0x60   : > { %p741_p9 = scmp.ne.s32.totalorder %s257_s26, %s740_s17  ;;  %s745_s11 = sshll.u32 %s835_s7, 4  ;;  %s746_s11 = int_to_ptr.vmem [resolvable:$false] %s745_s11 }
  0x61   : > { %s747_s12 = scalar_lea.vmem %s746_s11, 256  ;;  %p748_p1 = scmp.lt.s32.totalorder %s257_s26, %s746_s11 }
  0x62   : > { %p743_p2 = pnand %p741_p9, %p697_p0  ;;  %p749_p12 = scmp.lt.s32.totalorder %s747_s12, %s740_s17 }
  0x64   : > { %p744_p5 = pneg %p743_p2  ;;  %p750_p6 = por %p749_p12, %p748_p1 }
  0x66   : > { %p751_p8 = pnand %p750_p6, %p744_p5 }
  0x68   : > { %754 = shalt.err (!%p751_p8)
}
  0x69   : > { %618 = dma.hbm_to_vmem [thread:$0]  (!%p980_p11), %s989_s30, 128, %s257_s26, %s246_s8  }
  0x6a   : > { %p1146_p4 = scmp.ne.s32.totalorder %s1139_s29, 0 }
  0x6b   : > { %s1040_s2 = sand.u32 (!%p1146_p4), 1, %s821_s22   ;;  %p1147_p12 = scmp.ne.s32.totalorder (!%p1146_p4), %s1137_s27, 0 }
  0x6c   : > { %265 = sbr.rel (%p1146_p4) target bundleno = 534 (0x216), region = 44  ;;  %s1043_s13 = sshll.u32 (!%p1146_p4), %s1040_s2, 3 }
  0x6d   : > { %s268_s18 = scalar_lea.sflag (!%p1146_p4), [#allocation3], %s1040_s2  ;;  %s271_s10 = scalar_lea.vmem (!%p1146_p4), [#allocation2], %s1043_s13 }
  0x73   : > { %800 = dma.done.wait (%p1147_p12), %s268_s18, 128  }
  0x74   : > { %802 = vsyncadd (%p1147_p12), %s268_s18, 4294967168  ;;  %s276_s29 = sand.u32 1, %s896_s25   ;;  %s280_s30 = scalar_lea.vmem [#allocation5], %s1043_s13 }
  0x75   : > { %s277_s19 = scalar_lea.sflag [#allocation6], %s276_s29 }
  0x76   : > { %804 = dma.done.wait (%p1147_p12), %s277_s19, 128  }
  0x77   : > { %806 = vsyncadd (%p1147_p12), %s277_s19, 4294967168  ;;  %p1148_p11 = scmp.eq.s32.totalorder %s896_s25, 0 }
  0x79   : > { %808 = dma.done.wait (%p1148_p11), [#allocation6], 512   ;;  %p1149_p0 = pmov %p1148_p11 }
  0x7a   : > { %v836_v0 = vmov 0.0|0.0   ;;  %vm837_vm0 = vmmov 0   ;;  %v838_v1 = vmov 0.0   ;;  %v319_v2 = vld [vmem:[#allocation7] sm:$0xff]  ;;  %v320_v3 = vld [vmem:[#allocation7 + $0x8] sm:$0xff]  ;;  %v321_v4 = vld [vmem:[#allocation7 + $0x10] sm:$0xff] }
  0x7b   : > { %810 = vsyncadd (%p1149_p0), [#allocation6], 4294966784  ;;  %592 = vmatprep.subr.bf16.mxu0 %v836_v0  ;;  %589 = vmatprep.mubr.msk.f32.mxu0 %vm837_vm0, %v838_v1  ;;  %v593_v5 = vpack.c.bf16 %v320_v3, %v319_v2  ;;  %v322_v6 = vld [vmem:[#allocation7 + $0x18] sm:$0xff]  ;;  %v318_v8 = vld [vmem:[%s271_s10] sm:$0xff]  ;;  %vm330_vm1 = vcmask 261120   ;;  %s573_s23 = sshll.u32 %s896_s25, 7 }
  0x7c   : > { %v596_v7 = vpack.c.bf16 %v322_v6, %v321_v4  ;;  %v568_v9 = vld [vmem:[%s1126_s3] ss:$0 sm:$0xff]  ;;  %v404_v11 = vld [vmem:[%s280_s30] sm:$0xff]  ;;  %s317_s17 = scalar_lea.vmem [#allocation8], %s1043_s13  ;;  %s1078_s18 = scalar_lea.hbm %s1129_s6, %s573_s23 }
  0x7d   : > { %594 = vmatpush3.bf16.msra.mxu0 %v593_v5  ;;  %v570_v28 = vld [vmem:[%s1127_s4] ss:$0 sm:$0xff]  ;;  %s453_s7 = sshll.u32 %s317_s17, 4  ;;  %s440_s10 = scalar_lea.sflag [#allocation4], %s1040_s2  ;;  %s1080_s7 = int_to_ptr.vmem [resolvable:$true] %s453_s7 }
  0x7e   : > { %595 = vmatprep.subr.bf16.mxu0 %v836_v0  ;;  %v571_v30 = vld [vmem:[%s1128_s5] ss:$0 sm:$0xff]  ;;  %s755_s29 = scalar_lea.vmem %s1080_s7, 128  ;;  %p1150_p13 = scmp.ne.s32.totalorder %s1144_s14, 0 }
  0x7f   : > { %p756_p10 = scmp.ne.s32.totalorder %s1080_s7, %s755_s29  ;;  %s839_s25 = smov [#allocation8]  }
  0x80   : > { %s759_s13 = sshll.u32 %s839_s25, 4  ;;  %s760_s13 = int_to_ptr.vmem [resolvable:$false] %s759_s13 }
  0x81   : > { %597 = vmatpush3.bf16.msra.mxu0 %v596_v7  ;;  %p757_p3 = pnand %p756_p10, %p1150_p13  ;;  %s761_s19 = scalar_lea.vmem %s760_s13, 256 }
  0x82   : > { %p762_p9 = scmp.lt.s32.totalorder %s1080_s7, %s760_s13  ;;  %p763_p2 = scmp.lt.s32.totalorder %s761_s19, %s755_s29 }
  0x83   : > { %p758_p7 = pneg %p757_p3 }
  0x84   : > { %590 = vmatmul.mubr.msk.f32.vlgmr.msra.gmra.mrb[0].mxu0 %vm330_vm1, %v318_v8  ;;  %p764_p5 = por %p763_p2, %p762_p9 }
  0x86   : > { %p765_p1 = pnand %p764_p5, %p758_p7 }
 0x157   : > { %v400_v10 = vpop.f32.mrb[0].mxu0 }
 0x158   : > { %v401_v12 = vadd.f32 %v568_v9, %v400_v10  ;;  %v591_v13 = vpop.f32.mrb[1].mxu0 }
 0x15a   : > { %v405_v14 = vadd.f32 %v404_v11, %v401_v12 }
 0x15c   : > { %v406_v15 = vsel %vm330_vm1, %v405_v14, 0.0  ;;  %v410_v16 = vmul.f32 %v405_v14, %v405_v14 }
 0x15d   : > { %407 = vadd.xlane.f32.xlu0 %v406_v15 }
 0x15e   : > { %v411_v17 = vsel %vm330_vm1, %v410_v16, 0.0 }
 0x161   : > { %412 = vadd.xlane.f32.xlu0 %v411_v17 }
 0x1ea   : > { %v408_v18 = vpop.xlane.xlu0 %407 }
 0x1eb   : > { %v409_v19 = vmul.f32 0.03125, %v408_v18 }
 0x1ed   : > { %v415_v21 = vmul.f32 %v409_v19, %v409_v19  ;;  %v420_v26 = vsub.f32 %v405_v14, %v409_v19 }
 0x1ee   : > { %v413_v20 = vpop.xlane.xlu0 %412 }
 0x1ef   : > { %v414_v22 = vmul.f32 0.03125, %v413_v20 }
 0x1f1   : > { %v416_v23 = vsub.f32 %v414_v22, %v415_v21 }
 0x1f3   : > { %v417_v24 = vmax.f32 %v416_v23, 0.0 }
 0x1f5   : > { %v418_v25 = vadd.f32 1e-12, %v417_v24 }
 0x1f7   : > { %665 = vrsqrt.f32 %v418_v25 }
 0x201   : > { %v666_v27 = vpop.eup %665 }
 0x202   : > { %v421_v29 = vmul.f32 %v666_v27, %v420_v26 }
 0x204   : > { %v429_v31 = vmul.f32 %v570_v28, %v421_v29 }
 0x206   : > { %v437_v32 = vadd.f32 %v571_v30, %v429_v31 }
 0x208   : > { %438 = vst.msk [vmem:[%s317_s17] sm:$0xff] %vm330_vm1, %v437_v32 }
 0x209   : > { %768 = shalt.err (!%p765_p1)
}
 0x20a   : > { %s769_s2 = scalar_lea.hbm %s1078_s18, 128  ;;  %s773_s26 = scalar_lea.hbm %s1129_s6, 256 }
 0x20b   : > { %p770_p6 = scmp.ne.s32.totalorder %s1078_s18, %s769_s2  ;;  %p774_p12 = scmp.lt.u32.totalorder %s1078_s18, %s1129_s6 }
 0x20c   : > { %p775_p11 = scmp.lt.u32.totalorder %s773_s26, %s769_s2  ;;  %p777_p10 = scmp.lt.u32.totalorder %s769_s2, %s1078_s18 }
 0x20d   : > { %p771_p8 = pnand %p770_p6, %p1150_p13 }
 0x20e   : > { %p776_p0 = por %p775_p11, %p774_p12 }
 0x20f   : > { %p772_p4 = pneg %p771_p8 }
 0x210   : > { %p778_p3 = por %p777_p10, %p776_p0 }
 0x212   : > { %p779_p7 = pnand %p778_p3, %p772_p4 }
 0x214   : > { %782 = shalt.err (!%p779_p7)
}
 0x215   : > { %606 = dma.vmem_to_hbm [thread:$0]  (%p1150_p13), %s1080_s7, 128, %s1078_s18, %s440_s10  }
 0x216 PF: > { %s465_s16 = sand.u32 1, %s817_s21   ;;  %p1151_p9 = scmp.ne.s32.totalorder %s1138_s28, 0 }
 0x217   : > { %p1152_p2 = scmp.ge.s32.totalorder %s829_s24, 2  ;;  %s466_s20 = scalar_lea.sflag [#allocation4], %s465_s16 }
 0x219   : > { %p620_p5 = pnand %p1152_p2, %p1151_p9 }
 0x21b   : > { %812 = dma.done.wait (!%p620_p5), %s466_s20, 128  }
 0x21c   : > { %814 = vsyncadd (!%p620_p5), %s466_s20, 4294967168  ;;  %s1153_s23 = sld [smem:[#allocation13_spill]]  ;;  %s1154_s17 = sld [smem:[#allocation14_spill]] }
 0x21d   : > { %p22_p1 = scmp.ge.s32.totalorder %s931_s9, 4   ;;  %s1155_s21 = smov %s821_s22 }
 0x21e   : > { %s1158_s24 = smov %s931_s9 }
 0x21f   :  { %24 = sbr.rel (!%p22_p1) target bundleno = 9 (0x9), region = 106 }
 0x222   : > { %s1156_s22 = smov %s1153_s23  ;;  %s1157_s23 = smov %s1154_s17 }
 0x226   :  { %471 = vsyncpa [#allocation3], 1 }
 0x227   :  { %473 = vsyncpa [#allocation3 + $0x1], 1 }
 0x228   :  { %474 = vsyncpa [#allocation6], 1 }
 0x229   :  { %476 = vsyncpa [#allocation6 + $0x1], 1 }
 0x22a   :  { %477 = vsyncpa [#allocation4], 1 }
 0x22b   :  { %479 = vsyncpa [#allocation4 + $0x1], 1 }

// kernel: tpu_custom_call.1
= control target key start
LH: loop header
LB: loop body
LE: loop exit
PB: predicated region body
PF: predicated region fallthrough
CT: control target
= control target key end

     0   :  { %s1123_s0 = inlined_call_operand.hbm [shape: f32[16,32], index: 0, kind: input, shape index: {}]   ;;  %s1124_s1 = inlined_call_operand.hbm [shape: f32[16,32], index: 1, kind: input, shape index: {}]   ;;  %s1125_s2 = inlined_call_operand.hbm [shape: f32[32,32], index: 2, kind: input, shape index: {}]   ;;  %s1126_s3 = inlined_call_operand.vmem [shape: f32[1,32], index: 3, kind: input, shape index: {}]   ;;  %s1127_s4 = inlined_call_operand.vmem [shape: f32[1,32], index: 4, kind: input, shape index: {}]   ;;  %s1128_s5 = inlined_call_operand.vmem [shape: f32[1,32], index: 5, kind: input, shape index: {}]   ;;  %s1129_s6 = inlined_call_operand.hbm [shape: f32[16,32], index: 6, kind: output, shape index: {}]  }
   0x1   :  { %1135 = sst [smem:[#allocation15_spill]] %s1125_s2 }
   0x2   :  { %11 = vsyncpa [#allocation3], 0 }
   0x3   :  { %13 = vsyncpa [#allocation3 + $0x1], 0 }
   0x4   :  { %14 = vsyncpa [#allocation6], 0 }
   0x5   :  { %16 = vsyncpa [#allocation6 + $0x1], 0 }
   0x6   :  { %17 = vsyncpa [#allocation4], 0 }
   0x7   :  { %19 = vsyncpa [#allocation4 + $0x1], 0  ;;  %s875_s21 = smov 0   ;;  %s877_s22 = smov 0  }
   0x8   :  { %s879_s23 = smov 0   ;;  %s881_s24 = smov 0  }
   0x9 LB: > { %1136 = sst [smem:[#allocation13_spill]] %s825_s23  ;;  %s896_s25 = sadd.s32 4294967295, %s829_s24   ;;  %s829_s24 = sphi %s881_s24, %s1158_s24   ;;  %s825_s23 = sphi %s879_s23, %s1157_s23   ;;  %s821_s22 = sphi %s877_s22, %s1156_s22   ;;  %s817_s21 = sphi %s875_s21, %s1155_s21  }
   0xa   : > { %s555_s26 = sadd.s32 4294967294, %s829_s24   ;;  %p45_p0 = scmp.ne.s32.totalorder %s821_s22, %s817_s21 }
   0xb   : > { %p1130_p1 = scmp.eq.s32.totalorder %s896_s25, 0  ;;  %p185_p3 = scmp.eq.s32.totalorder %s555_s26, 1 }
   0xc   : > { %p556_p5 = scmp.ge.s32.totalorder %s829_s24, 1  ;;  %p192_p7 = scmp.lt.s32.totalorder %s829_s24, 3 }
   0xd   : > { %p905_p4 = por %p1130_p1, %p45_p0  ;;  %p910_p6 = por %p185_p3, %p45_p0 }
   0xe   : > { %p915_p8 = pnand %p556_p5, %p192_p7  ;;  %s831_s30 = smov [#allocation7]  }
   0xf   : > { %s1137_s27 = scalar_select %p905_p4, 1, 0 }
  0x10   : > { %s1138_s28 = scalar_select %p910_p6, 1, 0 }
  0x11   : > { %s1139_s29 = scalar_select %p915_p8, 1, 0 }
  0x12   : > { %s204_s7 = sshll.u32 %s831_s30, 4  ;;  %p608_p9 = pneg %p915_p8  ;;  %s919_s7 = int_to_ptr.vmem [resolvable:$true] %s204_s7 }
  0x13   : > { %s931_s9 = sadd.s32 1, %s829_s24   ;;  %s32_s10 = sadd.s32 1, %s825_s23 }
  0x14   : > { %p926_p11 = pnand %p608_p9, %p1130_p1  ;;  %s29_s11 = ssub.s32 %s829_s24, %s931_s9 }
  0x15   : > { %s1141_s2 = sld [smem:[#allocation15_spill]] }
  0x16   : > { %p669_p13 = pneg %p926_p11 }
  0x1b   : > { %s667_s14 = scalar_lea.hbm %s1141_s2, 512 }
  0x1c   : > { %p668_p12 = scmp.ne.s32.totalorder %s1141_s2, %s667_s14  ;;  %p674_p5 = scmp.lt.u32.totalorder %s667_s14, %s1141_s2 }
  0x1e   : > { %p670_p0 = pnand %p669_p13, %p668_p12 }
  0x20   : > { %p671_p3 = pneg %p670_p0 }
  0x22   : > { %p676_p7 = pnand %p674_p5, %p671_p3 }
  0x24   : > { %679 = shalt.err (!%p676_p7)
}
  0x25   : > { %s680_s19 = scalar_lea.vmem %s919_s7, 512  ;;  %p688_p2 = scmp.lt.s32.totalorder %s919_s7, %s919_s7 }
  0x26   : > { %p681_p9 = scmp.ne.s32.totalorder %s919_s7, %s680_s19  ;;  %p689_p6 = scmp.lt.s32.totalorder %s680_s19, %s680_s19 }
  0x28   : > { %p683_p10 = pnand %p681_p9, %p669_p13  ;;  %p690_p4 = por %p689_p6, %p688_p2 }
  0x2a   : > { %p684_p1 = pneg %p683_p10 }
  0x2c   : > { %p691_p8 = pnand %p690_p4, %p684_p1 }
  0x2e   : > { %694 = shalt.err (!%p691_p8)
}
  0x2f   : > { %s832_s20 = smov 128   ;;  %s833_s26 = smov 8  }
  0x30   : > { %611 = dma.hbm_to_vmem [thread:$0]  (!%p926_p11), %s1141_s2, 512, %s919_s7, [#allocation6], %s832_s20, %s832_s20, %s833_s26  }
  0x31   : > { %p30_p2 = scmp.eq.s32.totalorder %s29_s11, 0  ;;  %p39_p1 = scmp.ne.s32.totalorder %s825_s23, %s821_s22 }
  0x32   : > { %p40_p4 = scmp.eq.s32.totalorder %s829_s24, 0  ;;  %p624_p6 = scmp.lt.s32.totalorder %s829_s24, 2 }
  0x33   : > { %s962_s13 = scalar_select %p30_p2, %s825_s23, %s32_s10  }
  0x34   : > { %p41_p8 = por %p40_p4, %p39_p1  ;;  %p1143_p10 = scmp.eq.s32.totalorder %s896_s25, 1 }
  0x35   : > { %1142 = sst [smem:[#allocation14_spill]] %s962_s13  ;;  %s227_s15 = sand.u32 1, %s825_s23  }
  0x36   : > { %p966_p12 = por %p1143_p10, %p39_p1  ;;  %s560_s16 = sshll.u32 %s829_s24, 7 }
  0x37   : > { %s972_s17 = sshll.u32 %s227_s15, 3  ;;  %s977_s7 = scalar_lea.hbm %s1123_s0, %s560_s16 }
  0x38   : > { %s1144_s14 = scalar_select %p966_p12, 1, 0 }
  0x39   : > { %s231_s10 = scalar_lea.vmem [#allocation2], %s972_s17  ;;  %p980_p11 = pnand %p624_p6, %p41_p8 }
  0x3a   : > { %s238_s11 = sshll.u32 %s231_s10, 4  ;;  %s989_s30 = scalar_lea.hbm %s1124_s1, %s560_s16  ;;  %s984_s11 = int_to_ptr.vmem [resolvable:$true] %s238_s11 }
  0x3b   : > { %s228_s12 = scalar_lea.sflag [#allocation3], %s227_s15  ;;  %s695_s8 = scalar_lea.hbm %s977_s7, 128 }
  0x3c   : > { %p696_p13 = scmp.ne.s32.totalorder %s977_s7, %s695_s8  ;;  %p697_p0 = pneg %p980_p11 }
  0x3d   : > { %s700_s2 = scalar_lea.hbm %s1123_s0, 256  ;;  %p701_p7 = scmp.lt.u32.totalorder %s977_s7, %s1123_s0 }
  0x3e   : > { %p698_p3 = pnand %p697_p0, %p696_p13  ;;  %p702_p9 = scmp.lt.u32.totalorder %s700_s2, %s695_s8 }
  0x3f   : > { %p704_p1 = scmp.lt.u32.totalorder %s695_s8, %s977_s7 }
  0x40   : > { %p699_p5 = pneg %p698_p3  ;;  %p703_p2 = por %p702_p9, %p701_p7 }
  0x42   : > { %p705_p4 = por %p704_p1, %p703_p2 }
  0x44   : > { %p706_p6 = pnand %p705_p4, %p699_p5 }
  0x46   : > { %709 = shalt.err (!%p706_p6)
}
  0x47   : > { %s710_s15 = scalar_lea.vmem %s984_s11, 128  ;;  %s834_s16 = smov [#allocation2]  }
  0x48   : > { %p711_p8 = scmp.ne.s32.totalorder %s984_s11, %s710_s15  ;;  %s715_s20 = sshll.u32 %s834_s16, 4  ;;  %s716_s20 = int_to_ptr.vmem [resolvable:$false] %s715_s20 }
  0x49   : > { %s717_s23 = scalar_lea.vmem %s716_s20, 256  ;;  %p718_p3 = scmp.lt.s32.totalorder %s984_s11, %s716_s20 }
  0x4a   : > { %p713_p10 = pnand %p711_p8, %p697_p0  ;;  %p719_p7 = scmp.lt.s32.totalorder %s717_s23, %s710_s15 }
  0x4c   : > { %p714_p13 = pneg %p713_p10  ;;  %p720_p9 = por %p719_p7, %p718_p3 }
  0x4e   : > { %p721_p2 = pnand %p720_p9, %p714_p13 }
  0x50   : > { %724 = shalt.err (!%p721_p2)
}
  0x51   : > { %615 = dma.hbm_to_vmem [thread:$0]  (!%p980_p11), %s977_s7, 128, %s984_s11, %s228_s12  }
  0x52   : > { %s245_s2 = sand.u32 1, %s829_s24   ;;  %s249_s13 = scalar_lea.vmem [#allocation5], %s972_s17 }
  0x53   : > { %s256_s26 = sshll.u32 %s249_s13, 4  ;;  %s246_s8 = scalar_lea.sflag [#allocation6], %s245_s2  ;;  %s257_s26 = int_to_ptr.vmem [resolvable:$true] %s256_s26 }
  0x54   : > { %s725_s18 = scalar_lea.hbm %s989_s30, 128  ;;  %s730_s16 = scalar_lea.hbm %s1124_s1, 256 }
  0x55   : > { %p726_p5 = scmp.ne.s32.totalorder %s989_s30, %s725_s18  ;;  %p731_p6 = scmp.lt.u32.totalorder %s989_s30, %s1124_s1 }
  0x56   : > { %p732_p8 = scmp.lt.u32.totalorder %s730_s16, %s725_s18  ;;  %p734_p13 = scmp.lt.u32.totalorder %s725_s18, %s989_s30 }
  0x57   : > { %p728_p1 = pnand %p726_p5, %p697_p0 }
  0x58   : > { %p733_p10 = por %p732_p8, %p731_p6 }
  0x59   : > { %p729_p4 = pneg %p728_p1 }
  0x5a   : > { %p735_p3 = por %p734_p13, %p733_p10 }
  0x5c   : > { %p736_p7 = pnand %p735_p3, %p729_p4 }
  0x5e   : > { %739 = shalt.err (!%p736_p7)
}
  0x5f   : > { %s740_s17 = scalar_lea.vmem %s257_s26, 128  ;;  %s835_s7 = smov [#allocation5]  }
  0x60   : > { %p741_p9 = scmp.ne.s32.totalorder %s257_s26, %s740_s17  ;;  %s745_s11 = sshll.u32 %s835_s7, 4  ;;  %s746_s11 = int_to_ptr.vmem [resolvable:$false] %s745_s11 }
  0x61   : > { %s747_s12 = scalar_lea.vmem %s746_s11, 256  ;;  %p748_p1 = scmp.lt.s32.totalorder %s257_s26, %s746_s11 }
  0x62   : > { %p743_p2 = pnand %p741_p9, %p697_p0  ;;  %p749_p12 = scmp.lt.s32.totalorder %s747_s12, %s740_s17 }
  0x64   : > { %p744_p5 = pneg %p743_p2  ;;  %p750_p6 = por %p749_p12, %p748_p1 }
  0x66   : > { %p751_p8 = pnand %p750_p6, %p744_p5 }
  0x68   : > { %754 = shalt.err (!%p751_p8)
}
  0x69   : > { %618 = dma.hbm_to_vmem [thread:$0]  (!%p980_p11), %s989_s30, 128, %s257_s26, %s246_s8  }
  0x6a   : > { %p1146_p4 = scmp.ne.s32.totalorder %s1139_s29, 0 }
  0x6b   : > { %s1040_s2 = sand.u32 (!%p1146_p4), 1, %s821_s22   ;;  %p1147_p12 = scmp.ne.s32.totalorder (!%p1146_p4), %s1137_s27, 0 }
  0x6c   : > { %265 = sbr.rel (%p1146_p4) target bundleno = 534 (0x216), region = 44  ;;  %s1043_s13 = sshll.u32 (!%p1146_p4), %s1040_s2, 3 }
  0x6d   : > { %s268_s18 = scalar_lea.sflag (!%p1146_p4), [#allocation3], %s1040_s2  ;;  %s271_s10 = scalar_lea.vmem (!%p1146_p4), [#allocation2], %s1043_s13 }
  0x73   : > { %800 = dma.done.wait (%p1147_p12), %s268_s18, 128  }
  0x74   : > { %802 = vsyncadd (%p1147_p12), %s268_s18, 4294967168  ;;  %s276_s29 = sand.u32 1, %s896_s25   ;;  %s280_s30 = scalar_lea.vmem [#allocation5], %s1043_s13 }
  0x75   : > { %s277_s19 = scalar_lea.sflag [#allocation6], %s276_s29 }
  0x76   : > { %804 = dma.done.wait (%p1147_p12), %s277_s19, 128  }
  0x77   : > { %806 = vsyncadd (%p1147_p12), %s277_s19, 4294967168  ;;  %p1148_p11 = scmp.eq.s32.totalorder %s896_s25, 0 }
  0x79   : > { %808 = dma.done.wait (%p1148_p11), [#allocation6], 512   ;;  %p1149_p0 = pmov %p1148_p11 }
  0x7a   : > { %v836_v0 = vmov 0.0|0.0   ;;  %vm837_vm0 = vmmov 0   ;;  %v838_v1 = vmov 0.0   ;;  %v319_v2 = vld [vmem:[#allocation7] sm:$0xff]  ;;  %v320_v3 = vld [vmem:[#allocation7 + $0x8] sm:$0xff]  ;;  %v321_v4 = vld [vmem:[#allocation7 + $0x10] sm:$0xff] }
  0x7b   : > { %810 = vsyncadd (%p1149_p0), [#allocation6], 4294966784  ;;  %592 = vmatprep.subr.bf16.mxu0 %v836_v0  ;;  %589 = vmatprep.mubr.msk.f32.mxu0 %vm837_vm0, %v838_v1  ;;  %v593_v5 = vpack.c.bf16 %v320_v3, %v319_v2  ;;  %v322_v6 = vld [vmem:[#allocation7 + $0x18] sm:$0xff]  ;;  %v318_v8 = vld [vmem:[%s271_s10] sm:$0xff]  ;;  %vm330_vm1 = vcmask 261120   ;;  %s573_s23 = sshll.u32 %s896_s25, 7 }
  0x7c   : > { %v596_v7 = vpack.c.bf16 %v322_v6, %v321_v4  ;;  %v568_v9 = vld [vmem:[%s1126_s3] ss:$0 sm:$0xff]  ;;  %v404_v11 = vld [vmem:[%s280_s30] sm:$0xff]  ;;  %s317_s17 = scalar_lea.vmem [#allocation8], %s1043_s13  ;;  %s1078_s18 = scalar_lea.hbm %s1129_s6, %s573_s23 }
  0x7d   : > { %594 = vmatpush3.bf16.msra.mxu0 %v593_v5  ;;  %v570_v28 = vld [vmem:[%s1127_s4] ss:$0 sm:$0xff]  ;;  %s453_s7 = sshll.u32 %s317_s17, 4  ;;  %s440_s10 = scalar_lea.sflag [#allocation4], %s1040_s2  ;;  %s1080_s7 = int_to_ptr.vmem [resolvable:$true] %s453_s7 }
  0x7e   : > { %595 = vmatprep.subr.bf16.mxu0 %v836_v0  ;;  %v571_v30 = vld [vmem:[%s1128_s5] ss:$0 sm:$0xff]  ;;  %s755_s29 = scalar_lea.vmem %s1080_s7, 128  ;;  %p1150_p13 = scmp.ne.s32.totalorder %s1144_s14, 0 }
  0x7f   : > { %p756_p10 = scmp.ne.s32.totalorder %s1080_s7, %s755_s29  ;;  %s839_s25 = smov [#allocation8]  }
  0x80   : > { %s759_s13 = sshll.u32 %s839_s25, 4  ;;  %s760_s13 = int_to_ptr.vmem [resolvable:$false] %s759_s13 }
  0x81   : > { %597 = vmatpush3.bf16.msra.mxu0 %v596_v7  ;;  %p757_p3 = pnand %p756_p10, %p1150_p13  ;;  %s761_s19 = scalar_lea.vmem %s760_s13, 256 }
  0x82   : > { %p762_p9 = scmp.lt.s32.totalorder %s1080_s7, %s760_s13  ;;  %p763_p2 = scmp.lt.s32.totalorder %s761_s19, %s755_s29 }
  0x83   : > { %p758_p7 = pneg %p757_p3 }
  0x84   : > { %590 = vmatmul.mubr.msk.f32.vlgmr.msra.gmra.mrb[0].mxu0 %vm330_vm1, %v318_v8  ;;  %p764_p5 = por %p763_p2, %p762_p9 }
  0x86   : > { %p765_p1 = pnand %p764_p5, %p758_p7 }
 0x157   : > { %v400_v10 = vpop.f32.mrb[0].mxu0 }
 0x158   : > { %v401_v12 = vadd.f32 %v568_v9, %v400_v10  ;;  %v591_v13 = vpop.f32.mrb[1].mxu0 }
 0x15a   : > { %v405_v14 = vadd.f32 %v404_v11, %v401_v12 }
 0x15c   : > { %v406_v15 = vsel %vm330_vm1, %v405_v14, 0.0  ;;  %v410_v16 = vmul.f32 %v405_v14, %v405_v14 }
 0x15d   : > { %407 = vadd.xlane.f32.xlu0 %v406_v15 }
 0x15e   : > { %v411_v17 = vsel %vm330_vm1, %v410_v16, 0.0 }
 0x161   : > { %412 = vadd.xlane.f32.xlu0 %v411_v17 }
 0x1ea   : > { %v408_v18 = vpop.xlane.xlu0 %407 }
 0x1eb   : > { %v409_v19 = vmul.f32 0.03125, %v408_v18 }
 0x1ed   : > { %v415_v21 = vmul.f32 %v409_v19, %v409_v19  ;;  %v420_v26 = vsub.f32 %v405_v14, %v409_v19 }
 0x1ee   : > { %v413_v20 = vpop.xlane.xlu0 %412 }
 0x1ef   : > { %v414_v22 = vmul.f32 0.03125, %v413_v20 }
 0x1f1   : > { %v416_v23 = vsub.f32 %v414_v22, %v415_v21 }
 0x1f3   : > { %v417_v24 = vmax.f32 %v416_v23, 0.0 }
 0x1f5   : > { %v418_v25 = vadd.f32 1e-12, %v417_v24 }
 0x1f7   : > { %665 = vrsqrt.f32 %v418_v25 }
 0x201   : > { %v666_v27 = vpop.eup %665 }
 0x202   : > { %v421_v29 = vmul.f32 %v666_v27, %v420_v26 }
 0x204   : > { %v429_v31 = vmul.f32 %v570_v28, %v421_v29 }
 0x206   : > { %v437_v32 = vadd.f32 %v571_v30, %v429_v31 }
 0x208   : > { %438 = vst.msk [vmem:[%s317_s17] sm:$0xff] %vm330_vm1, %v437_v32 }
 0x209   : > { %768 = shalt.err (!%p765_p1)
}
 0x20a   : > { %s769_s2 = scalar_lea.hbm %s1078_s18, 128  ;;  %s773_s26 = scalar_lea.hbm %s1129_s6, 256 }
 0x20b   : > { %p770_p6 = scmp.ne.s32.totalorder %s1078_s18, %s769_s2  ;;  %p774_p12 = scmp.lt.u32.totalorder %s1078_s18, %s1129_s6 }
 0x20c   : > { %p775_p11 = scmp.lt.u32.totalorder %s773_s26, %s769_s2  ;;  %p777_p10 = scmp.lt.u32.totalorder %s769_s2, %s1078_s18 }
 0x20d   : > { %p771_p8 = pnand %p770_p6, %p1150_p13 }
 0x20e   : > { %p776_p0 = por %p775_p11, %p774_p12 }
 0x20f   : > { %p772_p4 = pneg %p771_p8 }
 0x210   : > { %p778_p3 = por %p777_p10, %p776_p0 }
 0x212   : > { %p779_p7 = pnand %p778_p3, %p772_p4 }
 0x214   : > { %782 = shalt.err (!%p779_p7)
}
 0x215   : > { %606 = dma.vmem_to_hbm [thread:$0]  (%p1150_p13), %s1080_s7, 128, %s1078_s18, %s440_s10  }
 0x216 PF: > { %s465_s16 = sand.u32 1, %s817_s21   ;;  %p1151_p9 = scmp.ne.s32.totalorder %s1138_s28, 0 }
 0x217   : > { %p1152_p2 = scmp.ge.s32.totalorder %s829_s24, 2  ;;  %s466_s20 = scalar_lea.sflag [#allocation4], %s465_s16 }
 0x219   : > { %p620_p5 = pnand %p1152_p2, %p1151_p9 }
 0x21b   : > { %812 = dma.done.wait (!%p620_p5), %s466_s20, 128  }
 0x21c   : > { %814 = vsyncadd (!%p620_p5), %s466_s20, 4294967168  ;;  %s1153_s23 = sld [smem:[#allocation13_spill]]  ;;  %s1154_s17 = sld [smem:[#allocation14_spill]] }
 0x21d   : > { %p22_p1 = scmp.ge.s32.totalorder %s931_s9, 4   ;;  %s1155_s21 = smov %s821_s22 }
 0x21e   : > { %s1158_s24 = smov %s931_s9 }
 0x21f   :  { %24 = sbr.rel (!%p22_p1) target bundleno = 9 (0x9), region = 106 }
 0x222   : > { %s1156_s22 = smov %s1153_s23  ;;  %s1157_s23 = smov %s1154_s17 }
 0x226   :  { %471 = vsyncpa [#allocation3], 1 }
 0x227   :  { %473 = vsyncpa [#allocation3 + $0x1], 1 }
 0x228   :  { %474 = vsyncpa [#allocation6], 1 }
 0x229   :  { %476 = vsyncpa [#allocation6 + $0x1], 1 }
 0x22a   :  { %477 = vsyncpa [#allocation4], 1 }
 0x22b   :  { %479 = vsyncpa [#allocation4 + $0x1], 1 }

</bundles_post_ra>
